<compile_context>
chip_gen: v7x
topology: tpu7x:2x2x1
jax: 0.10.0
libtpu: 0.0.40
codegen_flags: <defaults>
</compile_context>

<pallas_src>
import jax
import jax.numpy as jnp
from jax import lax
from jax.experimental import pallas as pl
from jax.experimental.pallas import tpu as pltpu

_SUB = 8     # sublane block: rows processed per aligned (8, Hp) store
_LANE = 128  # lane width: H is zero-padded up to a multiple of this


def _td_rnn_kernel(x_ref, wih_ref, whh_ref, b_ref, y_ref, h_scr, pre_scr):
    """One (TN, F) tile of the flattened (T*B, F) row sequence.

    x_ref   : (TN, F)    input tile (projection dtype)        [auto-pipelined DMA]
    wih_ref : (F, Hp)    W_ih^T, zero-padded to Hp lanes      [grid-invariant]
    whh_ref : (Hp, Hp)   W_hh^T, zero-padded                  [grid-invariant]
    b_ref   : (1, Hp)    b_ih + b_hh (f32), zero-padded       [grid-invariant]
    y_ref   : (TN, Hp)   output tile (f32)                    [auto-pipelined DMA]
    h_scr   : (1, Hp)    recurrent carry, persists across grid steps
    pre_scr : (2, 8, Hp) f32 double-buffered pre-activation staging
    """
    # Zero initial hidden state on the very first tile only (PyTorch default h_0).
    @pl.when(pl.program_id(0) == 0)
    def _init():
        h_scr[...] = jnp.zeros_like(h_scr)

    tn = y_ref.shape[0]
    hp = y_ref.shape[1]
    n_blocks = tn // _SUB
    bias = b_ref[...]                               # (1, Hp) f32

    # Keep W_hh^T resident in vregs only when it fits comfortably (Hp <= 128:
    # 8 bf16 / 16 f32 vregs).  For larger H, read it inside the loop and let
    # Mosaic decide, instead of forcing spills inside the serial chain.
    hoist_whh = hp <= _LANE
    whh_hoisted = whh_ref[...] if hoist_whh else None

    def proj_block(base, slot):
        # (8, F) @ (F, Hp) input projection for one row block, staged in f32.
        # Independent of the tanh chain -> its MXU pushes hide under the chain.
        pre_scr[slot] = (
            jnp.dot(x_ref[pl.ds(base, _SUB), :], wih_ref[...],
                    preferred_element_type=jnp.float32)
            + bias)

    proj_block(0, 0)                                 # prime block 0

    def blk_body(blk, h):
        slot = lax.rem(blk, 2)

        # Prefetch next block's pre-activation while this block's serial chain runs.
        @pl.when(blk + 1 < n_blocks)
        def _():
            proj_block(pl.multiple_of((blk + 1) * _SUB, _SUB), 1 - slot)

        whh = whh_hoisted if hoist_whh else whh_ref[...]
        pre8 = pre_scr[slot]                         # (8, Hp) f32, one aligned load
        rows = []
        for r in range(_SUB):                        # fully unrolled serial chain
            # TODO(synk): for H<=128 a VPU+XLU h@W_hh (lane->sublane transpose +
            # sublane reduce), or holding W_hh in the MXU via
            # matmul_push_rhs/acc_lhs/pop, are further latency cuts; the plain
            # bf16 MXU dot is kept here for portability across v5e/v6e/v7x.
            rec = jnp.dot(h.astype(whh.dtype), whh,
                          preferred_element_type=jnp.float32)
            h = jnp.tanh(pre8[r:r + 1, :] + rec)     # f32 add + tanh (EUP)
            rows.append(h)
        base = pl.multiple_of(blk * _SUB, _SUB)
        # One aligned, full-lane (8, Hp) store instead of eight masked (1, H) stores.
        y_ref[pl.ds(base, _SUB), :] = jnp.concatenate(rows, axis=0).astype(y_ref.dtype)
        return h

    h_last = lax.fori_loop(0, n_blocks, blk_body, h_scr[...])
    h_scr[...] = h_last                              # carry into the next grid tile


def time_distributed_rnn(x, w_ih, w_hh, b_ih, b_hh, *, batch_first=False,
                         tile_n=512, projection_dtype=jnp.bfloat16):
    """JAX/Pallas equivalent of TimeDistributed(nn.RNN(F, H)).forward(x).

    x      : (T, B, F)  (any rank>2 tensor with feature dim last)
    w_ih   : (H, F)   PyTorch layout      w_hh : (H, H)
    b_ih   : (H,)                         b_hh : (H,)
    returns: (T, B, H) for batch_first=False (default), else (x.shape[0], -1, H).

    projection_dtype : bf16 (default) is the fast MXU path; accumulation, bias
                       add, tanh and the recurrent carry are always f32.
                       Use jnp.float32 to match the f32 reference to ~1e-5.
    """
    F = x.shape[-1]
    H = w_ih.shape[0]
    Hp = pl.cdiv(H, _LANE) * _LANE            # lane-dense outputs / full-lane stores

    # ---- glue: the flatten from TimeDistributed.forward ----
    x_flat = x.reshape(-1, F).astype(projection_dtype)
    N = x_flat.shape[0]

    # Zero-pad weights/bias to Hp lanes.  Padded lanes stay exactly 0 through
    # the recurrence (tanh(0 + 0) = 0), so this is numerically exact.
    wih_t = jnp.zeros((F, Hp), projection_dtype).at[:, :H].set(
        jnp.transpose(w_ih).astype(projection_dtype))
    whh_t = jnp.zeros((Hp, Hp), projection_dtype).at[:H, :H].set(
        jnp.transpose(w_hh).astype(projection_dtype))
    b = jnp.zeros((1, Hp), jnp.float32).at[0, :H].set(
        (b_ih + b_hh).astype(jnp.float32))

    # ---- tile the flattened row dim; budget VMEM for v7x's 32 MiB scoped default ----
    xb = jnp.dtype(projection_dtype).itemsize
    budget = 20 * 1024 * 1024
    fixed = 2 * (F * Hp * xb + Hp * Hp * xb + Hp * 4)      # weights/bias (+pipeline slack)
    per_row = 2 * (F * xb + Hp * 4)                        # double-buffered x + y rows
    if budget > fixed:
        max_tn = max(_SUB, (budget - fixed) // per_row // _SUB * _SUB)
    else:
        max_tn = _SUB
    tn = max(_SUB, min(int(tile_n), max_tn, pl.cdiv(N, _SUB) * _SUB))
    tn = (tn // _SUB) * _SUB

    # Pad trailing rows with zeros.  Padding sits at the END of the row
    # sequence (recurrence only flows forward), so it cannot affect the first
    # N real rows; padded outputs are sliced off below.
    n_pad = pl.cdiv(N, tn) * tn
    if n_pad != N:
        x_flat = jnp.pad(x_flat, ((0, n_pad - N), (0, 0)))

    est_vmem = fixed + tn * per_row + 2 * _SUB * Hp * 4 + Hp * 4
    compiler_kwargs = dict(dimension_semantics=("arbitrary",))
    if est_vmem > 16 * 1024 * 1024:
        # Re-budget explicitly; cap at v7x's 64 MiB physical VMEM.
        compiler_kwargs["vmem_limit_bytes"] = int(min(est_vmem * 3 // 2,
                                                      64 * 1024 * 1024))

    y_flat = pl.pallas_call(
        _td_rnn_kernel,
        out_shape=jax.ShapeDtypeStruct((n_pad, Hp), jnp.float32),
        grid_spec=pltpu.PrefetchScalarGridSpec(
            num_scalar_prefetch=0,
            grid=(n_pad // tn,),
            in_specs=[
                pl.BlockSpec((tn, F), lambda i: (i, 0)),    # x tile (pipelined DMA)
                pl.BlockSpec((F, Hp), lambda i: (0, 0)),    # W_ih^T (grid-invariant)
                pl.BlockSpec((Hp, Hp), lambda i: (0, 0)),   # W_hh^T (grid-invariant)
                pl.BlockSpec((1, Hp), lambda i: (0, 0)),    # bias   (grid-invariant)
            ],
            out_specs=pl.BlockSpec((tn, Hp), lambda i: (i, 0)),
            scratch_shapes=[
                pltpu.VMEM((1, Hp), jnp.float32),           # recurrent carry
                pltpu.VMEM((2, _SUB, Hp), jnp.float32),     # pre-activation dbl buffer
            ],
        ),
        compiler_params=pltpu.CompilerParams(**compiler_kwargs),
    )(x_flat, wih_t, whh_t, b)

    y_flat = y_flat[:N, :H]

    # ---- glue: the un-reshape from TimeDistributed.forward ----
    if batch_first:
        return y_flat.reshape(x.shape[0], -1, H)    # y.view(x.size(0), -1, H)
    return y_flat.reshape(-1, x.shape[1], H)        # y.view(-1, x.size(1), H)


def _reference(x, w_ih, w_hh, b_ih, b_hh, batch_first=False):
    """Pure-JAX f32 reference of the same semantics (for correctness check)."""
    F = x.shape[-1]
    H = w_ih.shape[0]
    x_flat = x.reshape(-1, F)

    def step(h, x_t):
        h_new = jnp.tanh(x_t @ w_ih.T + b_ih + h @ w_hh.T + b_hh)
        return h_new, h_new

    h0 = jnp.zeros((H,), jnp.float32)
    _, ys = lax.scan(step, h0, x_flat)
    if batch_first:
        return ys.reshape(x.shape[0], -1, H)
    return ys.reshape(-1, x.shape[1], H)


if __name__ == "__main__":
    T, B, F, H = 8, 2, 16, 32

    key = jax.random.PRNGKey(0)
    kx, k1, k2, k3, k4 = jax.random.split(key, 5)

    # Deterministic init matching PyTorch nn.RNN default U(-1/sqrt(H), 1/sqrt(H)).
    bound = 1.0 / jnp.sqrt(jnp.float32(H))
    x = jax.random.normal(kx, (T, B, F), dtype=jnp.float32)
    w_ih = jax.random.uniform(k1, (H, F), jnp.float32, -bound, bound)
    w_hh = jax.random.uniform(k2, (H, H), jnp.float32, -bound, bound)
    b_ih = jax.random.uniform(k3, (H,), jnp.float32, -bound, bound)
    b_hh = jax.random.uniform(k4, (H,), jnp.float32, -bound, bound)

    y_expected = _reference(x, w_ih, w_hh, b_ih, b_hh, batch_first=False)

    # 1) f32 path, single tile: matches the f32 reference tightly.
    y_f32 = time_distributed_rnn(x, w_ih, w_hh, b_ih, b_hh,
                                 projection_dtype=jnp.float32)
    y_f32 = jax.block_until_ready(y_f32)
    assert y_f32.shape == (T, B, H), y_f32.shape
    assert jnp.allclose(y_f32, y_expected, atol=1e-5, rtol=1e-5), "f32 mismatch"

    # 2) f32 path, multi-tile (tile_n=8 -> grid=(2,)): exercises the cross-tile
    #    hidden-state carry and the per-block projection double buffer.
    y_mt = time_distributed_rnn(x, w_ih, w_hh, b_ih, b_hh,
                                projection_dtype=jnp.float32, tile_n=8)
    y_mt = jax.block_until_ready(y_mt)
    assert jnp.allclose(y_mt, y_expected, atol=1e-5, rtol=1e-5), "multi-tile mismatch"

    # 3) Default bf16 fast path: looser tolerance (bf16 inputs, f32 accumulate/tanh).
    y_bf16 = time_distributed_rnn(x, w_ih, w_hh, b_ih, b_hh)
    y_bf16 = jax.block_until_ready(y_bf16)
    assert y_bf16.shape == (T, B, H), y_bf16.shape
    assert jnp.allclose(y_bf16, y_expected, atol=5e-2, rtol=5e-2), "bf16 mismatch"

    # 4) batch_first reshaping path (shape check; same flatten semantics).
    y_bfirst = time_distributed_rnn(x, w_ih, w_hh, b_ih, b_hh, batch_first=True)
    y_bfirst = jax.block_until_ready(y_bfirst)
    assert y_bfirst.shape == (T, B, H), y_bfirst.shape

    # TODO(synk): the `len(x.size()) <= 2` early-return branch returns the raw
    # module output tuple (y, h_n); only the rank>2 TimeDistributed path is
    # implemented here.
    print("KERNEL_OK")
</pallas_src>

<mosaic_0001>
module attributes {stable_mosaic.version = 11 : i64} {
  func.func @_td_rnn_kernel(%arg0: i32, %arg1: memref<16x16xf32, #tpu.memory_space<vmem>>, %arg2: memref<16x128xf32, #tpu.memory_space<vmem>>, %arg3: memref<128x128xf32, #tpu.memory_space<vmem>>, %arg4: memref<1x128xf32, #tpu.memory_space<vmem>>, %arg5: memref<16x128xf32, #tpu.memory_space<vmem>>, %arg6: memref<1x128xf32, #tpu.memory_space<vmem>>, %arg7: memref<2x8x128xf32, #tpu.memory_space<vmem>>) attributes {dimension_semantics = [#tpu.dimension_semantics<arbitrary>], iteration_bounds = array<i64: 1>, scalar_prefetch = 0 : i64, scratch_operands = 2 : i64, tpu.core_type = #tpu.core_type<tc>, window_params = [{transform_indices = @transform_0, window_bounds = array<i64: 16, 16>}, {pipeline_mode = #tpu.pipeline_mode<synchronous>, transform_indices = @transform_1, window_bounds = array<i64: 16, 128>}, {pipeline_mode = #tpu.pipeline_mode<synchronous>, transform_indices = @transform_2, window_bounds = array<i64: 128, 128>}, {pipeline_mode = #tpu.pipeline_mode<synchronous>, transform_indices = @transform_3, window_bounds = array<i64: 1, 128>}, {transform_indices = @transform_4, window_bounds = array<i64: 16, 128>}]} {
    %c0_i32 = arith.constant 0 : i32
    %0 = arith.cmpi eq, %arg0, %c0_i32 : i32
    %1 = arith.extui %0 : i1 to i32
    %c0_i32_0 = arith.constant 0 : i32
    %2 = arith.cmpi ne, %1, %c0_i32_0 : i32
    scf.if %2 {
      %cst_17 = arith.constant 0.000000e+00 : f32
      %17 = vector.broadcast %cst_17 : f32 to vector<1x128xf32>
      %c0_18 = arith.constant 0 : index
      %c0_19 = arith.constant 0 : index
      %18 = vector.load %arg6[%c0_18, %c0_19] : memref<1x128xf32, #tpu.memory_space<vmem>>, vector<1x128xf32>
      tpu.vector_store %arg6[%c0_18, %c0_19], %17 {strides = array<i32>} : memref<1x128xf32, #tpu.memory_space<vmem>>, vector<1x128xf32>,
    } else {
    }
    %c0 = arith.constant 0 : index
    %c0_1 = arith.constant 0 : index
    %3 = vector.load %arg4[%c0, %c0_1] : memref<1x128xf32, #tpu.memory_space<vmem>>, vector<1x128xf32>
    %c0_2 = arith.constant 0 : index
    %c0_3 = arith.constant 0 : index
    %4 = vector.load %arg3[%c0_2, %c0_3] : memref<128x128xf32, #tpu.memory_space<vmem>>, vector<128x128xf32>
    %c0_4 = arith.constant 0 : index
    %c0_5 = arith.constant 0 : index
    %5 = vector.load %arg1[%c0_4, %c0_5] : memref<16x16xf32, #tpu.memory_space<vmem>>, vector<8x16xf32>
    %c0_6 = arith.constant 0 : index
    %c0_7 = arith.constant 0 : index
    %6 = vector.load %arg2[%c0_6, %c0_7] : memref<16x128xf32, #tpu.memory_space<vmem>>, vector<16x128xf32>
    %cst = arith.constant dense<0.000000e+00> : vector<8x128xf32>
    %7 = tpu.matmul %5, %6, %cst {dimension_numbers = #tpu.dot_dimension_numbers<[1], [0], [0], [1], [0, 0, 1, 1], [], []>} : vector<8x16xf32>, vector<16x128xf32>, vector<8x128xf32> -> vector<8x128xf32>
    %8 = vector.broadcast %3 : vector<1x128xf32> to vector<8x128xf32>
    %9 = arith.addf %7, %8 : vector<8x128xf32>
    %c0_8 = arith.constant 0 : index
    %c0_9 = arith.constant 0 : index
    %c0_10 = arith.constant 0 : index
    %10 = vector.load %arg7[%c0_8, %c0_9, %c0_10] : memref<2x8x128xf32, #tpu.memory_space<vmem>>, vector<1x8x128xf32>
    %11 = vector.shape_cast %10 : vector<1x8x128xf32> to vector<8x128xf32>
    %12 = vector.shape_cast %9 : vector<8x128xf32> to vector<1x8x128xf32>
    tpu.vector_store %arg7[%c0_8, %c0_9, %c0_10], %12 {strides = array<i32>} : memref<2x8x128xf32, #tpu.memory_space<vmem>>, vector<1x8x128xf32>,
    %c0_11 = arith.constant 0 : index
    %c0_12 = arith.constant 0 : index
    %13 = vector.load %arg6[%c0_11, %c0_12] : memref<1x128xf32, #tpu.memory_space<vmem>>, vector<1x128xf32>
    %c0_i32_13 = arith.constant 0 : i32
    %c2_i32 = arith.constant 2 : i32
    %14 = arith.addi %c0_i32_13, %c2_i32 : i32
    %c1_i32 = arith.constant 1 : i32
    %15 = scf.for %arg8 = %c0_i32_13 to %14 step %c1_i32 iter_args(%arg9 = %13) -> (vector<1x128xf32>)  : i32 {
      %c2_i32_17 = arith.constant 2 : i32
      %17 = arith.remsi %arg8, %c2_i32_17 : i32
      %c1_i32_18 = arith.constant 1 : i32
      %18 = arith.addi %arg8, %c1_i32_18 : i32
      %c2_i32_19 = arith.constant 2 : i32
      %19 = arith.cmpi slt, %18, %c2_i32_19 : i32
      %20 = arith.extui %19 : i1 to i32
      %c0_i32_20 = arith.constant 0 : i32
      %21 = arith.cmpi ne, %20, %c0_i32_20 : i32
      scf.if %21 {
        %c1_i32_32 = arith.constant 1 : i32
        %62 = arith.addi %arg8, %c1_i32_32 : i32
        %c8_i32_33 = arith.constant 8 : i32
        %63 = arith.muli %62, %c8_i32_33 : i32
        %64 = tpu.assume_multiple %63, 8 : i32
        %c1_i32_34 = arith.constant 1 : i32
        %65 = arith.subi %c1_i32_34, %17 : i32
        %66 = arith.index_cast %64 : i32 to index
        %c0_35 = arith.constant 0 : index
        %67 = vector.load %arg1[%66, %c0_35] : memref<16x16xf32, #tpu.memory_space<vmem>>, vector<8x16xf32>
        %c0_36 = arith.constant 0 : index
        %c0_37 = arith.constant 0 : index
        %68 = vector.load %arg2[%c0_36, %c0_37] : memref<16x128xf32, #tpu.memory_space<vmem>>, vector<16x128xf32>
        %cst_38 = arith.constant dense<0.000000e+00> : vector<8x128xf32>
        %69 = tpu.matmul %67, %68, %cst_38 {dimension_numbers = #tpu.dot_dimension_numbers<[1], [0], [0], [1], [0, 0, 1, 1], [], []>} : vector<8x16xf32>, vector<16x128xf32>, vector<8x128xf32> -> vector<8x128xf32>
        %70 = vector.broadcast %3 : vector<1x128xf32> to vector<8x128xf32>
        %71 = arith.addf %69, %70 : vector<8x128xf32>
        %72 = arith.index_cast %65 : i32 to index
        %c0_39 = arith.constant 0 : index
        %c0_40 = arith.constant 0 : index
        %73 = vector.load %arg7[%72, %c0_39, %c0_40] : memref<2x8x128xf32, #tpu.memory_space<vmem>>, vector<1x8x128xf32>
        %74 = vector.shape_cast %73 : vector<1x8x128xf32> to vector<8x128xf32>
        %75 = vector.shape_cast %71 : vector<8x128xf32> to vector<1x8x128xf32>
        tpu.vector_store %arg7[%72, %c0_39, %c0_40], %75 {strides = array<i32>} : memref<2x8x128xf32, #tpu.memory_space<vmem>>, vector<1x8x128xf32>,
      } else {
      }
      %22 = arith.index_cast %17 : i32 to index
      %c0_21 = arith.constant 0 : index
      %c0_22 = arith.constant 0 : index
      %23 = vector.load %arg7[%22, %c0_21, %c0_22] : memref<2x8x128xf32, #tpu.memory_space<vmem>>, vector<1x8x128xf32>
      %24 = vector.shape_cast %23 : vector<1x8x128xf32> to vector<8x128xf32>
      %cst_23 = arith.constant dense<0.000000e+00> : vector<1x128xf32>
      %25 = tpu.matmul %arg9, %4, %cst_23 {dimension_numbers = #tpu.dot_dimension_numbers<[1], [0], [0], [1], [0, 0, 1, 1], [], []>} : vector<1x128xf32>, vector<128x128xf32>, vector<1x128xf32> -> vector<1x128xf32>
      %26 = vector.extract_strided_slice %24 {offsets = [0, 0], sizes = [1, 128], strides = [1, 1]} : vector<8x128xf32> to vector<1x128xf32>
      %27 = arith.addf %26, %25 : vector<1x128xf32>
      %28 = math.tanh %27 : vector<1x128xf32>
      %cst_24 = arith.constant dense<0.000000e+00> : vector<1x128xf32>
      %29 = tpu.matmul %28, %4, %cst_24 {dimension_numbers = #tpu.dot_dimension_numbers<[1], [0], [0], [1], [0, 0, 1, 1], [], []>} : vector<1x128xf32>, vector<128x128xf32>, vector<1x128xf32> -> vector<1x128xf32>
      %30 = vector.extract_strided_slice %24 {offsets = [1, 0], sizes = [1, 128], strides = [1, 1]} : vector<8x128xf32> to vector<1x128xf32>
      %31 = arith.addf %30, %29 : vector<1x128xf32>
      %32 = math.tanh %31 : vector<1x128xf32>
      %cst_25 = arith.constant dense<0.000000e+00> : vector<1x128xf32>
      %33 = tpu.matmul %32, %4, %cst_25 {dimension_numbers = #tpu.dot_dimension_numbers<[1], [0], [0], [1], [0, 0, 1, 1], [], []>} : vector<1x128xf32>, vector<128x128xf32>, vector<1x128xf32> -> vector<1x128xf32>
      %34 = vector.extract_strided_slice %24 {offsets = [2, 0], sizes = [1, 128], strides = [1, 1]} : vector<8x128xf32> to vector<1x128xf32>
      %35 = arith.addf %34, %33 : vector<1x128xf32>
      %36 = math.tanh %35 : vector<1x128xf32>
      %cst_26 = arith.constant dense<0.000000e+00> : vector<1x128xf32>
      %37 = tpu.matmul %36, %4, %cst_26 {dimension_numbers = #tpu.dot_dimension_numbers<[1], [0], [0], [1], [0, 0, 1, 1], [], []>} : vector<1x128xf32>, vector<128x128xf32>, vector<1x128xf32> -> vector<1x128xf32>
      %38 = vector.extract_strided_slice %24 {offsets = [3, 0], sizes = [1, 128], strides = [1, 1]} : vector<8x128xf32> to vector<1x128xf32>
      %39 = arith.addf %38, %37 : vector<1x128xf32>
      %40 = math.tanh %39 : vector<1x128xf32>
      %cst_27 = arith.constant dense<0.000000e+00> : vector<1x128xf32>
      %41 = tpu.matmul %40, %4, %cst_27 {dimension_numbers = #tpu.dot_dimension_numbers<[1], [0], [0], [1], [0, 0, 1, 1], [], []>} : vector<1x128xf32>, vector<128x128xf32>, vector<1x128xf32> -> vector<1x128xf32>
      %42 = vector.extract_strided_slice %24 {offsets = [4, 0], sizes = [1, 128], strides = [1, 1]} : vector<8x128xf32> to vector<1x128xf32>
      %43 = arith.addf %42, %41 : vector<1x128xf32>
      %44 = math.tanh %43 : vector<1x128xf32>
      %cst_28 = arith.constant dense<0.000000e+00> : vector<1x128xf32>
      %45 = tpu.matmul %44, %4, %cst_28 {dimension_numbers = #tpu.dot_dimension_numbers<[1], [0], [0], [1], [0, 0, 1, 1], [], []>} : vector<1x128xf32>, vector<128x128xf32>, vector<1x128xf32> -> vector<1x128xf32>
      %46 = vector.extract_strided_slice %24 {offsets = [5, 0], sizes = [1, 128], strides = [1, 1]} : vector<8x128xf32> to vector<1x128xf32>
      %47 = arith.addf %46, %45 : vector<1x128xf32>
      %48 = math.tanh %47 : vector<1x128xf32>
      %cst_29 = arith.constant dense<0.000000e+00> : vector<1x128xf32>
      %49 = tpu.matmul %48, %4, %cst_29 {dimension_numbers = #tpu.dot_dimension_numbers<[1], [0], [0], [1], [0, 0, 1, 1], [], []>} : vector<1x128xf32>, vector<128x128xf32>, vector<1x128xf32> -> vector<1x128xf32>
      %50 = vector.extract_strided_slice %24 {offsets = [6, 0], sizes = [1, 128], strides = [1, 1]} : vector<8x128xf32> to vector<1x128xf32>
      %51 = arith.addf %50, %49 : vector<1x128xf32>
      %52 = math.tanh %51 : vector<1x128xf32>
      %cst_30 = arith.constant dense<0.000000e+00> : vector<1x128xf32>
      %53 = tpu.matmul %52, %4, %cst_30 {dimension_numbers = #tpu.dot_dimension_numbers<[1], [0], [0], [1], [0, 0, 1, 1], [], []>} : vector<1x128xf32>, vector<128x128xf32>, vector<1x128xf32> -> vector<1x128xf32>
      %54 = vector.extract_strided_slice %24 {offsets = [7, 0], sizes = [1, 128], strides = [1, 1]} : vector<8x128xf32> to vector<1x128xf32>
      %55 = arith.addf %54, %53 : vector<1x128xf32>
      %56 = math.tanh %55 : vector<1x128xf32>
      %c8_i32 = arith.constant 8 : i32
      %57 = arith.muli %arg8, %c8_i32 : i32
      %58 = tpu.assume_multiple %57, 8 : i32
      %59 = tpu.concatenate %28, %32, %36, %40, %44, %48, %52, %56 in 0 : vector<1x128xf32>, vector<1x128xf32>, vector<1x128xf32>, vector<1x128xf32>, vector<1x128xf32>, vector<1x128xf32>, vector<1x128xf32>, vector<1x128xf32> -> vector<8x128xf32>
      %60 = arith.index_cast %58 : i32 to index
      %c0_31 = arith.constant 0 : index
      %61 = vector.load %arg5[%60, %c0_31] : memref<16x128xf32, #tpu.memory_space<vmem>>, vector<8x128xf32>
      tpu.vector_store %arg5[%60, %c0_31], %59 {strides = array<i32>} : memref<16x128xf32, #tpu.memory_space<vmem>>, vector<8x128xf32>,
      scf.yield %56 : vector<1x128xf32>
    }
    %c2_i32_14 = arith.constant 2 : i32
    %c0_15 = arith.constant 0 : index
    %c0_16 = arith.constant 0 : index
    %16 = vector.load %arg6[%c0_15, %c0_16] : memref<1x128xf32, #tpu.memory_space<vmem>>, vector<1x128xf32>
    tpu.vector_store %arg6[%c0_15, %c0_16], %15 {strides = array<i32>} : memref<1x128xf32, #tpu.memory_space<vmem>>, vector<1x128xf32>,
    return
  }
  func.func @transform_0(%arg0: i32) -> (i32, i32) {
    %c0_i32 = arith.constant 0 : i32
    %c0_i32_0 = arith.constant 0 : i32
    return %arg0, %c0_i32 : i32, i32
  }
  func.func @transform_1(%arg0: i32) -> (i32, i32) {
    %c0_i32 = arith.constant 0 : i32
    %c0_i32_0 = arith.constant 0 : i32
    %c0_i32_1 = arith.constant 0 : i32
    return %c0_i32, %c0_i32_0 : i32, i32
  }
  func.func @transform_2(%arg0: i32) -> (i32, i32) {
    %c0_i32 = arith.constant 0 : i32
    %c0_i32_0 = arith.constant 0 : i32
    %c0_i32_1 = arith.constant 0 : i32
    return %c0_i32, %c0_i32_0 : i32, i32
  }
  func.func @transform_3(%arg0: i32) -> (i32, i32) {
    %c0_i32 = arith.constant 0 : i32
    %c0_i32_0 = arith.constant 0 : i32
    %c0_i32_1 = arith.constant 0 : i32
    return %c0_i32, %c0_i32_0 : i32, i32
  }
  func.func @transform_4(%arg0: i32) -> (i32, i32) {
    %c0_i32 = arith.constant 0 : i32
    %c0_i32_0 = arith.constant 0 : i32
    return %arg0, %c0_i32 : i32, i32
  }
}

</mosaic_0001>

<bundles_post_ra>
// kernel: tpu_custom_call.1
= control target key start
LH: loop header
LB: loop body
LE: loop exit
PB: predicated region body
PF: predicated region fallthrough
CT: control target
= control target key end

     0   :  { %9 = vsyncpa [#allocation5], 0  ;;  %s2112_s0 = inlined_call_operand.hbm [shape: f32[16,16], index: 0, kind: input, shape index: {}]   ;;  %s2113_s1 = inlined_call_operand.hbm [shape: f32[16,128], index: 1, kind: input, shape index: {}]   ;;  %s2114_s2 = inlined_call_operand.hbm [shape: f32[128,128], index: 2, kind: input, shape index: {}]   ;;  %s2115_s3 = inlined_call_operand.vmem [shape: f32[1,128], index: 3, kind: input, shape index: {}]   ;;  %s2116_s4 = inlined_call_operand.hbm [shape: f32[16,128], index: 4, kind: output, shape index: {}]  }
   0x1   :  { %10 = vsyncpa [#allocation8], 0 }
   0x2   :  { %11 = vsyncpa [#allocation6], 0  ;;  %s1741_s15 = smov [#allocation7]   ;;  %s1742_s17 = smov [#allocation4]  }
   0x3   :  { %s29_s16 = sshll.u32 %s1741_s15, 4  ;;  %s17_s18 = sshll.u32 %s1742_s17, 4  ;;  %s30_s16 = int_to_ptr.vmem [resolvable:$true] %s29_s16  ;;  %s1781_s18 = int_to_ptr.vmem [resolvable:$true] %s17_s18 }
   0x4   :  { %s1631_s21 = scalar_lea.hbm %s2113_s1, 256 }
   0x5   :  { %p1632_p0 = scmp.ne.s32.totalorder %s2113_s1, %s1631_s21  ;;  %p1635_p1 = scmp.lt.u32.totalorder %s1631_s21, %s2113_s1 }
   0x7   :  { %p1637_p2 = pnand %p1635_p1, %p1632_p0 }
   0x9   :  { %1640 = shalt.err (!%p1637_p2)
}
   0xa   :  { %s1641_s26 = scalar_lea.vmem %s30_s16, 256  ;;  %p1646_p4 = scmp.lt.s32.totalorder %s30_s16, %s30_s16 }
   0xb   :  { %p1642_p3 = scmp.ne.s32.totalorder %s30_s16, %s1641_s26  ;;  %p1647_p5 = scmp.lt.s32.totalorder %s1641_s26, %s1641_s26 }
   0xd   :  { %p1648_p6 = por %p1647_p5, %p1646_p4 }
   0xf   :  { %p1649_p7 = pnand %p1648_p6, %p1642_p3 }
  0x11   :  { %1652 = shalt.err (!%p1649_p7)
}
  0x12   :  { %s1743_s27 = smov 128   ;;  %s1744_s28 = smov 8  }
  0x13   :  { %35 = dma.hbm_to_vmem [thread:$0]  %s2113_s1, 256, %s30_s16, [#allocation8], %s1743_s27, %s1743_s27, %s1744_s28  }
  0x14   :  { %s1653_s7 = scalar_lea.hbm %s2112_s0, 256 }
  0x15   :  { %p1654_p8 = scmp.ne.s32.totalorder %s2112_s0, %s1653_s7  ;;  %p1657_p9 = scmp.lt.u32.totalorder %s1653_s7, %s2112_s0 }
  0x17   :  { %p1659_p10 = pnand %p1657_p9, %p1654_p8 }
  0x19   :  { %1662 = shalt.err (!%p1659_p10)
}
  0x1a   :  { %s1663_s12 = scalar_lea.vmem %s1781_s18, 256  ;;  %p1668_p12 = scmp.lt.s32.totalorder %s1781_s18, %s1781_s18 }
  0x1b   :  { %p1664_p11 = scmp.ne.s32.totalorder %s1781_s18, %s1663_s12  ;;  %p1669_p13 = scmp.lt.s32.totalorder %s1663_s12, %s1663_s12 }
  0x1d   :  { %p1670_p0 = por %p1669_p13, %p1668_p12 }
  0x1f   :  { %p1671_p1 = pnand %p1670_p0, %p1664_p11 }
  0x21   :  { %1674 = shalt.err (!%p1671_p1)
}
  0x22   :  { %23 = dma.hbm_to_vmem [thread:$0]  %s2112_s0, 256, %s1781_s18, [#allocation5], %s1743_s27, %s1743_s27, %s1744_s28  }
  0x23   :  { %s1745_s14 = smov [#allocation9]   ;;  %s1675_s19 = scalar_lea.hbm %s2114_s2, 2048 }
  0x24   :  { %s41_s15 = sshll.u32 %s1745_s14, 4  ;;  %p1676_p2 = scmp.ne.s32.totalorder %s2114_s2, %s1675_s19  ;;  %s42_s15 = int_to_ptr.vmem [resolvable:$true] %s41_s15 }
  0x25   :  { %p1679_p3 = scmp.lt.u32.totalorder %s1675_s19, %s2114_s2 }
  0x27   :  { %p1681_p4 = pnand %p1679_p3, %p1676_p2 }
  0x29   :  { %1684 = shalt.err (!%p1681_p4)
}
  0x2a   :  { %s1685_s24 = scalar_lea.vmem %s42_s15, 2048  ;;  %p1690_p6 = scmp.lt.s32.totalorder %s42_s15, %s42_s15 }
  0x2b   :  { %p1686_p5 = scmp.ne.s32.totalorder %s42_s15, %s1685_s24  ;;  %p1691_p7 = scmp.lt.s32.totalorder %s1685_s24, %s1685_s24 }
  0x2d   :  { %p1692_p8 = por %p1691_p7, %p1690_p6 }
  0x2f   :  { %p1693_p9 = pnand %p1692_p8, %p1686_p5 }
  0x31   :  { %1696 = shalt.err (!%p1693_p9)
}
  0x32   :  { %47 = dma.hbm_to_vmem [thread:$0]  %s2114_s2, 2048, %s42_s15, [#allocation8], %s1743_s27, %s1743_s27, %s1744_s28  }
  0x33   :  { %1727 = dma.done.wait [#allocation5], 256  }
  0x34   :  { %1728 = vsyncadd [#allocation5], 4294967040 }
  0x35   :  { %1729 = dma.done.wait [#allocation8], 2304  }
  0x36   :  { %1730 = vsyncadd [#allocation8], 4294964992  ;;  %v1746_v0 = vmov 0.0|0.0   ;;  %v1747_v1 = vmov 0.0   ;;  %vm1748_vm0 = vmmov 0   ;;  %v1833_v2 = vld [vmem:[#allocation9] sm:$0xff] }
  0x37   :  { %1386 = vmatprep.subr.bf16.mxu0 %v1746_v0  ;;  %63 = vst [vmem:[#allocation2] sm:$0x1] %v1747_v1  ;;  %1096 = vmatprep.mubr.msk.f32.mxu0 %vm1748_vm0, %v1747_v1  ;;  %v1835_v3 = vld [vmem:[#allocation9 + $0x8] sm:$0xff]  ;;  %v1837_v4 = vld [vmem:[#allocation9 + $0x10] sm:$0xff]  ;;  %v1839_v5 = vld [vmem:[#allocation9 + $0x18] sm:$0xff]  ;;  %vm90_vm1 = vcmask 130048  }
  0x38   :  { %v1841_v6 = vld [vmem:[#allocation9 + $0x20] sm:$0xff]  ;;  %v1843_v7 = vld [vmem:[#allocation9 + $0x28] sm:$0xff]  ;;  %v1845_v8 = vld [vmem:[#allocation9 + $0x30] sm:$0xff]  ;;  %s1874_s26 = smov 0  }
  0x39   :  { %v1847_v9 = vld [vmem:[#allocation9 + $0x38] sm:$0xff]  ;;  %v1849_v10 = vld [vmem:[#allocation9 + $0x40] sm:$0xff]  ;;  %v1851_v11 = vld [vmem:[#allocation9 + $0x48] sm:$0xff] }
  0x3a   :  { %v1853_v12 = vld [vmem:[#allocation9 + $0x50] sm:$0xff]  ;;  %v1855_v13 = vld [vmem:[#allocation9 + $0x58] sm:$0xff]  ;;  %v1857_v14 = vld [vmem:[#allocation9 + $0x60] sm:$0xff] }
  0x3b   :  { %v1859_v15 = vld [vmem:[#allocation9 + $0x68] sm:$0xff]  ;;  %v1861_v16 = vld [vmem:[#allocation9 + $0x70] sm:$0xff]  ;;  %v1863_v17 = vld [vmem:[#allocation9 + $0x78] sm:$0xff] }
  0x3c   :  { %v82_v18 = vld [vmem:[#allocation7] sm:$0xff]  ;;  %v83_v19 = vld [vmem:[#allocation7 + $0x8] sm:$0xff]  ;;  %v81_v22 = vld [vmem:[#allocation4] sm:$0xff] }
  0x3d   :  { %v1387_v20 = vpack.c.bf16 %v83_v19, %v82_v18  ;;  %v1869_v23 = vld [vmem:[%s2115_s3] ss:$0 sm:$0xff] }
  0x3e   :  { %v165_v21 = vld [vmem:[#allocation2] sm:$0x1]  }
  0x3f   :  { %1388 = vmatpush3.bf16.msra.mxu0 %v1387_v20 }
  0x42   :  { %1097 = vmatmul.mubr.msk.f32.vlgmr.msra.gmra.mrb[0].mxu0 %vm90_vm1, %v81_v22 }
 0x115   :  { %v160_v24 = vpop.f32.mrb[0].mxu0 }
 0x116   :  { %v161_v25 = vadd.f32 %v1869_v23, %v160_v24  ;;  %v1098_v26 = vpop.f32.mrb[1].mxu0 }
 0x118   :  { %164 = vst [vmem:[#allocation3] sm:$0xff] %v161_v25 }
 0x119 LB: > { %p173_p10 = scmp.lt.s32.totalorder %s1739_s26, 0  ;;  %s174_s3 = ssub.s32 0, %s1739_s26  ;;  %s1739_s26 = sphi %s1874_s26, %s2119_s26   ;;  %v1735_v21 = vphi %v165_v21, %v2118_v21  }
 0x11a   : > { %s942_s29 = smin.u32 %s1739_s26, %s174_s3  ;;  %s179_s30 = sadd.s32 1, %s1739_s26  }
 0x11b   : > { %s176_s5 = sand.u32 1, %s942_s29   ;;  %p1890_p11 = scmp.ge.s32.totalorder %s179_s30, 2 }
 0x11c   : > { %s177_s6 = ssub.s32 0, %s176_s5  ;;  %v188_v27 = vld [vmem:[#allocation7] sm:$0xff] (!%p1890_p11)  ;;  %v189_v28 = vld [vmem:[#allocation7 + $0x8] sm:$0xff] (!%p1890_p11)  ;;  %s944_s8 = sshll.u32 (!%p1890_p11), %s1739_s26, 3  ;;  %v1749_v29 = vmov (!%p1890_p11), 0.0|0.0   ;;  %vm1750_vm2 = vmmov (!%p1890_p11), 0  }
 0x11d   : > { %s2121_s6 = smov (!%p173_p10, %s177_s6), %s176_s5  ;;  %183 = sbr.rel (%p1890_p11) target bundleno = 506 (0x1fa), region = 44 }
 0x11e   : > { %1389 = vmatprep.subr.bf16.mxu0 (!%p1890_p11), %v1749_v29  ;;  %v1390_v30 = vpack.c.bf16 (!%p1890_p11), %v189_v28, %v188_v27  ;;  %v1751_v31 = vmov (!%p1890_p11), 0.0   ;;  %s924_s9 = scalar_lea.vmem (!%p1890_p11), [#allocation4], %s944_s8  ;;  %s185_s10 = ssub.s32 (!%p1890_p11), 1, %s2121_s6 }
 0x11f   : > { %1103 = vmatprep.mubr.msk.f32.mxu0 (!%p1890_p11), %vm1750_vm2, %v1751_v31  ;;  %v945_v32 = vld [vmem:[%s924_s9 + $0x8] sm:$0xff] (!%p1890_p11)  ;;  %s947_s11 = sshll.u32 (!%p1890_p11), %s185_s10, 3 }
 0x120   : > { %1391 = vmatpush3.bf16.msra.mxu0 (!%p1890_p11), %v1390_v30  ;;  %s264_s12 = scalar_lea.vmem (!%p1890_p11), [#allocation3], %s947_s11 }
 0x123   : > { %1104 = vmatmul.mubr.msk.f32.vlgmr.msra.gmra.mrb[0].mxu0 (!%p1890_p11), %vm90_vm1, %v945_v32 }
 0x1f6   : > { %v259_v33 = vpop.f32.mrb[0].mxu0 }
 0x1f7   : > { %v260_v34 = vadd.f32 %v1869_v23, %v259_v33  ;;  %v1105_v35 = vpop.f32.mrb[1].mxu0 }
 0x1f9   : > { %265 = vst [vmem:[%s264_s12] sm:$0xff] %v260_v34 }
 0x1fa PF: > { %v1902_v36 = vpack.c.bf16 %v1835_v3, %v1833_v2  ;;  %v1752_v37 = vmov 0.0|0.0   ;;  %v1908_v38 = vpack.c.bf16 %v1839_v5, %v1837_v4  ;;  %vm1753_vm3 = vmmov 0   ;;  %s948_s1 = sshll.u32 %s2121_s6, 3  ;;  %s949_s14 = sshll.u32 %s1739_s26, 3 }
 0x1fb   : > { %1392 = vmatprep.subr.bf16.mxu0 %v1752_v37  ;;  %1416 = vmatprep.subr.bf16.mxu1 %v1752_v37  ;;  %v1754_v39 = vmov 0.0   ;;  %v1921_v40 = vpack.c.bf16 %v1843_v7, %v1841_v6  ;;  %v1929_v41 = vpack.c.bf16 %v1847_v9, %v1845_v8  ;;  %v1937_v42 = vpack.c.bf16 %v1851_v11, %v1849_v10  ;;  %s267_s13 = scalar_lea.vmem [#allocation3], %s948_s1  ;;  %s899_s15 = scalar_lea.vmem [#allocation10], %s949_s14 }
 0x1fc   : > { %1394 = vmatpush3.bf16.msra.mxu0 %v1902_v36  ;;  %1138 = vmatprep.mubr.msk.f32.mxu0 %vm1753_vm3, %v1754_v39  ;;  %v1945_v43 = vpack.c.bf16 %v1855_v13, %v1853_v12  ;;  %v1953_v44 = vpack.c.bf16 %v1859_v15, %v1857_v14  ;;  %v1961_v45 = vpack.c.bf16 %v1863_v17, %v1861_v16  ;;  %vm885_vm4 = vcmask 1040384   ;;  %s2119_s26 = smov %s179_s30  ;;  %s1755_s16 = smov (%p1890_p11), [#allocation10]  }
 0x1fd   : > { %1395 = vmatprep.subr.bf16.mxu0 %v1752_v37  ;;  %1418 = vmatpush3.bf16.msra.mxu1 %v1902_v36  ;;  %vm887_vm5 = vcmask 1041408   ;;  %vm889_vm6 = vcmask 1042432   ;;  %vm891_vm7 = vcmask 1043456   ;;  %vm893_vm8 = vcmask 1044480   ;;  %s910_s17 = sshll.u32 (%p1890_p11), %s1755_s16, 4  ;;  %s911_s17 = int_to_ptr.vmem [resolvable:$true] %s910_s17 }
 0x1fe   : > { %1173 = vmatprep.mubr.msk.f32.mxu1 %vm1753_vm3, %v1754_v39  ;;  %1419 = vmatprep.subr.bf16.mxu1 %v1752_v37  ;;  %vm895_vm9 = vcmask 1045504   ;;  %vm897_vm10 = vcmask 1046528   ;;  %s1697_s19 = scalar_lea.vmem (%p1890_p11), %s911_s17, 256  ;;  %p1702_p13 = scmp.lt.s32.totalorder (%p1890_p11), %s911_s17, %s911_s17 }
 0x1ff   :  { %p1698_p12 = scmp.ne.s32.totalorder (%p1890_p11), %s911_s17, %s1697_s19  ;;  %p1703_p0 = scmp.lt.s32.totalorder (%p1890_p11), %s1697_s19, %s1697_s19 }
 0x200   : > { %1397 = vmatpush3.bf16.msra.mxu0 %v1908_v38  ;;  %v1990_v46 = vld [vmem:[%s267_s13] sm:$0xff] }
 0x201   : > { %1398 = vmatprep.subr.bf16.mxu0 %v1752_v37  ;;  %1421 = vmatpush3.bf16.msra.mxu1 %v1908_v38  ;;  %p1704_p1 = por (%p1890_p11), %p1703_p0, %p1702_p13 }
 0x202   : > { %1422 = vmatprep.subr.bf16.mxu1 %v1752_v37 }
 0x203   :  { %p1705_p2 = pnand (%p1890_p11), %p1704_p1, %p1698_p12 }
 0x204   : > { %1400 = vmatpush3.bf16.msra.mxu0 %v1921_v40 }
 0x205   : > { %1401 = vmatprep.subr.bf16.mxu0 %v1752_v37  ;;  %1424 = vmatpush3.bf16.msra.mxu1 %v1921_v40 }
 0x206   : > { %1425 = vmatprep.subr.bf16.mxu1 %v1752_v37 }
 0x208   : > { %1403 = vmatpush3.bf16.msra.mxu0 %v1929_v41 }
 0x209   : > { %1404 = vmatprep.subr.bf16.mxu0 %v1752_v37  ;;  %1427 = vmatpush3.bf16.msra.mxu1 %v1929_v41 }
 0x20a   : > { %1428 = vmatprep.subr.bf16.mxu1 %v1752_v37 }
 0x20c   : > { %1406 = vmatpush3.bf16.msra.mxu0 %v1937_v42 }
 0x20d   : > { %1407 = vmatprep.subr.bf16.mxu0 %v1752_v37  ;;  %1430 = vmatpush3.bf16.msra.mxu1 %v1937_v42 }
 0x20e   : > { %1431 = vmatprep.subr.bf16.mxu1 %v1752_v37 }
 0x210   : > { %1409 = vmatpush3.bf16.msra.mxu0 %v1945_v43 }
 0x211   : > { %1410 = vmatprep.subr.bf16.mxu0 %v1752_v37  ;;  %1433 = vmatpush3.bf16.msra.mxu1 %v1945_v43 }
 0x212   : > { %1434 = vmatprep.subr.bf16.mxu1 %v1752_v37 }
 0x214   : > { %1412 = vmatpush3.bf16.msra.mxu0 %v1953_v44 }
 0x215   : > { %1413 = vmatprep.subr.bf16.mxu0 %v1752_v37  ;;  %1436 = vmatpush3.bf16.msra.mxu1 %v1953_v44 }
 0x216   : > { %1437 = vmatprep.subr.bf16.mxu1 %v1752_v37 }
 0x218   : > { %1415 = vmatpush3.bf16.msra.mxu0 %v1961_v45 }
 0x219   : > { %1440 = vmatprep.subr.bf16.mxu0 %v1752_v37  ;;  %1439 = vmatpush3.bf16.msra.mxu1 %v1961_v45 }
 0x21a   : > { %1464 = vmatprep.subr.bf16.mxu1 %v1752_v37 }
 0x21b   : > { %1139 = vmatmul.mubr.f32.vlgmr.msra.gmra.mrb[0].mxu0 %v1735_v21 }
 0x21c   : > { %1442 = vmatpush3.bf16.msra.mxu0 %v1902_v36  ;;  %1208 = vmatprep.mubr.msk.f32.mxu0 %vm1753_vm3, %v1754_v39 }
 0x21d   : > { %1443 = vmatprep.subr.bf16.mxu0 %v1752_v37 }
 0x220   : > { %1445 = vmatpush3.bf16.msra.mxu0 %v1908_v38 }
 0x221   : > { %1446 = vmatprep.subr.bf16.mxu0 %v1752_v37 }
 0x224   : > { %1448 = vmatpush3.bf16.msra.mxu0 %v1921_v40 }
 0x225   : > { %1449 = vmatprep.subr.bf16.mxu0 %v1752_v37 }
 0x228   : > { %1451 = vmatpush3.bf16.msra.mxu0 %v1929_v41 }
 0x229   : > { %1452 = vmatprep.subr.bf16.mxu0 %v1752_v37 }
 0x22c   : > { %1454 = vmatpush3.bf16.msra.mxu0 %v1937_v42 }
 0x22d   : > { %1455 = vmatprep.subr.bf16.mxu0 %v1752_v37 }
 0x230   : > { %1457 = vmatpush3.bf16.msra.mxu0 %v1945_v43 }
 0x231   : > { %1458 = vmatprep.subr.bf16.mxu0 %v1752_v37 }
 0x234   : > { %1460 = vmatpush3.bf16.msra.mxu0 %v1953_v44 }
 0x235   : > { %1461 = vmatprep.subr.bf16.mxu0 %v1752_v37 }
 0x238   : > { %1463 = vmatpush3.bf16.msra.mxu0 %v1961_v45 }
 0x239   : > { %1488 = vmatprep.subr.bf16.mxu0 %v1752_v37 }
 0x2ee   : > { %v335_v47 = vpop.f32.mrb[0].mxu0 }
 0x2ef   : > { %v339_v48 = vadd.f32 %v335_v47, %v1990_v46  ;;  %v1140_v49 = vpop.f32.mrb[1].mxu0 }
 0x2f1   : > { %1615 = vtanh.f32 %v339_v48 }
 0x2fb   : > { %v1616_v50 = vpop.eup %1615 }
 0x2fc   : > { %1174 = vmatmul.mubr.f32.vlgmr.msra.gmra.mrb[0].mxu1 %v1616_v50 }
 0x2fd   : > { %1466 = vmatpush3.bf16.msra.mxu1 %v1902_v36  ;;  %1243 = vmatprep.mubr.msk.f32.mxu1 %vm1753_vm3, %v1754_v39 }
 0x2fe   : > { %1467 = vmatprep.subr.bf16.mxu1 %v1752_v37 }
 0x301   : > { %1469 = vmatpush3.bf16.msra.mxu1 %v1908_v38 }
 0x302   : > { %1470 = vmatprep.subr.bf16.mxu1 %v1752_v37 }
 0x305   : > { %1472 = vmatpush3.bf16.msra.mxu1 %v1921_v40 }
 0x306   : > { %1473 = vmatprep.subr.bf16.mxu1 %v1752_v37 }
 0x309   : > { %1475 = vmatpush3.bf16.msra.mxu1 %v1929_v41 }
 0x30a   : > { %1476 = vmatprep.subr.bf16.mxu1 %v1752_v37 }
 0x30d   : > { %1478 = vmatpush3.bf16.msra.mxu1 %v1937_v42 }
 0x30e   : > { %1479 = vmatprep.subr.bf16.mxu1 %v1752_v37 }
 0x311   : > { %1481 = vmatpush3.bf16.msra.mxu1 %v1945_v43 }
 0x312   : > { %1482 = vmatprep.subr.bf16.mxu1 %v1752_v37 }
 0x315   : > { %1484 = vmatpush3.bf16.msra.mxu1 %v1953_v44 }
 0x316   : > { %1485 = vmatprep.subr.bf16.mxu1 %v1752_v37 }
 0x319   : > { %1487 = vmatpush3.bf16.msra.mxu1 %v1961_v45 }
 0x31a   : > { %1512 = vmatprep.subr.bf16.mxu1 %v1752_v37 }
 0x3cf   : > { %v407_v51 = vpop.f32.mrb[0].mxu1 }
 0x3d0   : > { %v412_v52 = vrot.slane %v407_v51, 7  ;;  %v1175_v53 = vpop.f32.mrb[1].mxu1 }
 0x3d2   : > { %v414_v54 = vadd.f32 %v412_v52, %v1990_v46 }
 0x3d4   : > { %1617 = vtanh.f32 %v414_v54 }
 0x3de   : > { %v1618_v55 = vpop.eup %1617 }
 0x3df   : > { %v417_v56 = vrot.slane %v1618_v55, 1  ;;  %v886_v62 = vsel %vm885_vm4, %v1616_v50, %v1618_v55 }
 0x3e1   : > { %1209 = vmatmul.mubr.f32.vlgmr.msra.gmra.mrb[2].mxu0 %v417_v56 }
 0x3e2   : > { %1490 = vmatpush3.bf16.msra.mxu0 %v1902_v36  ;;  %1278 = vmatprep.mubr.msk.f32.mxu0 %vm1753_vm3, %v1754_v39 }
 0x3e3   : > { %1491 = vmatprep.subr.bf16.mxu0 %v1752_v37 }
 0x3e6   : > { %1493 = vmatpush3.bf16.msra.mxu0 %v1908_v38 }
 0x3e7   : > { %1494 = vmatprep.subr.bf16.mxu0 %v1752_v37 }
 0x3ea   : > { %1496 = vmatpush3.bf16.msra.mxu0 %v1921_v40 }
 0x3eb   : > { %1497 = vmatprep.subr.bf16.mxu0 %v1752_v37 }
 0x3ee   : > { %1499 = vmatpush3.bf16.msra.mxu0 %v1929_v41 }
 0x3ef   : > { %1500 = vmatprep.subr.bf16.mxu0 %v1752_v37 }
 0x3f2   : > { %1502 = vmatpush3.bf16.msra.mxu0 %v1937_v42 }
 0x3f3   : > { %1503 = vmatprep.subr.bf16.mxu0 %v1752_v37 }
 0x3f6   : > { %1505 = vmatpush3.bf16.msra.mxu0 %v1945_v43 }
 0x3f7   : > { %1506 = vmatprep.subr.bf16.mxu0 %v1752_v37 }
 0x3fa   : > { %1508 = vmatpush3.bf16.msra.mxu0 %v1953_v44 }
 0x3fb   : > { %1509 = vmatprep.subr.bf16.mxu0 %v1752_v37 }
 0x3fe   : > { %1511 = vmatpush3.bf16.msra.mxu0 %v1961_v45 }
 0x3ff   : > { %1536 = vmatprep.subr.bf16.mxu0 %v1752_v37 }
 0x4b4   : > { %v485_v57 = vpop.f32.mrb[2].mxu0 }
 0x4b5   : > { %v490_v58 = vrot.slane %v485_v57, 6  ;;  %v1210_v59 = vpop.f32.mrb[3].mxu0 }
 0x4b7   : > { %v492_v60 = vadd.f32 %v490_v58, %v1990_v46 }
 0x4b9   : > { %1619 = vtanh.f32 %v492_v60 }
 0x4c3   : > { %v1620_v61 = vpop.eup %1619 }
 0x4c4   : > { %v888_v63 = vsel %vm887_vm5, %v886_v62, %v1620_v61  ;;  %v495_v0 = vrot.slane %v1620_v61, 2 }
 0x4c6   : > { %1244 = vmatmul.mubr.f32.vlgmr.msra.gmra.mrb[2].mxu1 %v495_v0 }
 0x4c7   : > { %1514 = vmatpush3.bf16.msra.mxu1 %v1902_v36  ;;  %1313 = vmatprep.mubr.msk.f32.mxu1 %vm1753_vm3, %v1754_v39 }
 0x4c8   : > { %1515 = vmatprep.subr.bf16.mxu1 %v1752_v37 }
 0x4cb   : > { %1517 = vmatpush3.bf16.msra.mxu1 %v1908_v38 }
 0x4cc   : > { %1518 = vmatprep.subr.bf16.mxu1 %v1752_v37 }
 0x4cf   : > { %1520 = vmatpush3.bf16.msra.mxu1 %v1921_v40 }
 0x4d0   : > { %1521 = vmatprep.subr.bf16.mxu1 %v1752_v37 }
 0x4d3   : > { %1523 = vmatpush3.bf16.msra.mxu1 %v1929_v41 }
 0x4d4   : > { %1524 = vmatprep.subr.bf16.mxu1 %v1752_v37 }
 0x4d7   : > { %1526 = vmatpush3.bf16.msra.mxu1 %v1937_v42 }
 0x4d8   : > { %1527 = vmatprep.subr.bf16.mxu1 %v1752_v37 }
 0x4db   : > { %1529 = vmatpush3.bf16.msra.mxu1 %v1945_v43 }
 0x4dc   : > { %1530 = vmatprep.subr.bf16.mxu1 %v1752_v37 }
 0x4df   : > { %1532 = vmatpush3.bf16.msra.mxu1 %v1953_v44 }
 0x4e0   : > { %1533 = vmatprep.subr.bf16.mxu1 %v1752_v37 }
 0x4e3   : > { %1535 = vmatpush3.bf16.msra.mxu1 %v1961_v45 }
 0x4e4   : > { %1560 = vmatprep.subr.bf16.mxu1 %v1752_v37 }
 0x599   : > { %v563_v1 = vpop.f32.mrb[2].mxu1 }
 0x59a   : > { %v568_v18 = vrot.slane %v563_v1, 5  ;;  %v1245_v19 = vpop.f32.mrb[3].mxu1 }
 0x59c   : > { %v570_v20 = vadd.f32 %v568_v18, %v1990_v46 }
 0x59e   : > { %1621 = vtanh.f32 %v570_v20 }
 0x5a8   : > { %v1622_v21 = vpop.eup %1621 }
 0x5a9   : > { %v890_v22 = vsel %vm889_vm6, %v888_v63, %v1622_v21  ;;  %v573_v24 = vrot.slane %v1622_v21, 3 }
 0x5ab   : > { %1279 = vmatmul.mubr.f32.vlgmr.msra.gmra.mrb[4].mxu0 %v573_v24 }
 0x5ac   : > { %1538 = vmatpush3.bf16.msra.mxu0 %v1902_v36  ;;  %1348 = vmatprep.mubr.msk.f32.mxu0 %vm1753_vm3, %v1754_v39 }
 0x5ad   : > { %1539 = vmatprep.subr.bf16.mxu0 %v1752_v37 }
 0x5b0   : > { %1541 = vmatpush3.bf16.msra.mxu0 %v1908_v38 }
 0x5b1   : > { %1542 = vmatprep.subr.bf16.mxu0 %v1752_v37 }
 0x5b4   : > { %1544 = vmatpush3.bf16.msra.mxu0 %v1921_v40 }
 0x5b5   : > { %1545 = vmatprep.subr.bf16.mxu0 %v1752_v37 }
 0x5b8   : > { %1547 = vmatpush3.bf16.msra.mxu0 %v1929_v41 }
 0x5b9   : > { %1548 = vmatprep.subr.bf16.mxu0 %v1752_v37 }
 0x5bc   : > { %1550 = vmatpush3.bf16.msra.mxu0 %v1937_v42 }
 0x5bd   : > { %1551 = vmatprep.subr.bf16.mxu0 %v1752_v37 }
 0x5c0   : > { %1553 = vmatpush3.bf16.msra.mxu0 %v1945_v43 }
 0x5c1   : > { %1554 = vmatprep.subr.bf16.mxu0 %v1752_v37 }
 0x5c4   : > { %1556 = vmatpush3.bf16.msra.mxu0 %v1953_v44 }
 0x5c5   : > { %1557 = vmatprep.subr.bf16.mxu0 %v1752_v37 }
 0x5c8   : > { %1559 = vmatpush3.bf16.msra.mxu0 %v1961_v45 }
 0x67e   : > { %v641_v25 = vpop.f32.mrb[4].mxu0 }
 0x67f   : > { %v646_v26 = vrot.slane %v641_v25, 4  ;;  %v1280_v27 = vpop.f32.mrb[5].mxu0 }
 0x681   : > { %v648_v28 = vadd.f32 %v646_v26, %v1990_v46 }
 0x683   : > { %1623 = vtanh.f32 %v648_v28 }
 0x68d   : > { %v1624_v29 = vpop.eup %1623 }
 0x68e   : > { %v892_v30 = vsel %vm891_vm7, %v890_v22, %v1624_v29  ;;  %v651_v31 = vrot.slane %v1624_v29, 4 }
 0x690   : > { %1314 = vmatmul.mubr.f32.vlgmr.msra.gmra.mrb[4].mxu1 %v651_v31 }
 0x691   : > { %1562 = vmatpush3.bf16.msra.mxu1 %v1902_v36  ;;  %1383 = vmatprep.mubr.msk.f32.mxu1 %vm1753_vm3, %v1754_v39 }
 0x692   : > { %1563 = vmatprep.subr.bf16.mxu1 %v1752_v37 }
 0x695   : > { %1565 = vmatpush3.bf16.msra.mxu1 %v1908_v38 }
 0x696   : > { %1566 = vmatprep.subr.bf16.mxu1 %v1752_v37 }
 0x699   : > { %1568 = vmatpush3.bf16.msra.mxu1 %v1921_v40 }
 0x69a   : > { %1569 = vmatprep.subr.bf16.mxu1 %v1752_v37 }
 0x69d   : > { %1571 = vmatpush3.bf16.msra.mxu1 %v1929_v41 }
 0x69e   : > { %1572 = vmatprep.subr.bf16.mxu1 %v1752_v37 }
 0x6a1   : > { %1574 = vmatpush3.bf16.msra.mxu1 %v1937_v42 }
 0x6a2   : > { %1575 = vmatprep.subr.bf16.mxu1 %v1752_v37 }
 0x6a5   : > { %1577 = vmatpush3.bf16.msra.mxu1 %v1945_v43 }
 0x6a6   : > { %1578 = vmatprep.subr.bf16.mxu1 %v1752_v37 }
 0x6a9   : > { %1580 = vmatpush3.bf16.msra.mxu1 %v1953_v44 }
 0x6aa   : > { %1581 = vmatprep.subr.bf16.mxu1 %v1752_v37 }
 0x6ad   : > { %1583 = vmatpush3.bf16.msra.mxu1 %v1961_v45 }
 0x763   : > { %v719_v32 = vpop.f32.mrb[4].mxu1 }
 0x764   : > { %v724_v33 = vrot.slane %v719_v32, 3  ;;  %v1315_v34 = vpop.f32.mrb[5].mxu1 }
 0x766   : > { %v726_v35 = vadd.f32 %v724_v33, %v1990_v46 }
 0x768   : > { %1625 = vtanh.f32 %v726_v35 }
 0x772   : > { %v1626_v36 = vpop.eup %1625 }
 0x773   : > { %v894_v38 = vsel %vm893_vm8, %v892_v30, %v1626_v36  ;;  %v729_v39 = vrot.slane %v1626_v36, 5 }
 0x775   : > { %1349 = vmatmul.mubr.f32.vlgmr.msra.gmra.mrb[6].mxu0 %v729_v39 }
 0x848   : > { %v797_v40 = vpop.f32.mrb[6].mxu0 }
 0x849   : > { %v802_v41 = vrot.slane %v797_v40, 2  ;;  %v1350_v42 = vpop.f32.mrb[7].mxu0 }
 0x84b   : > { %v804_v43 = vadd.f32 %v802_v41, %v1990_v46 }
 0x84d   : > { %1627 = vtanh.f32 %v804_v43 }
 0x857   : > { %v1628_v37 = vpop.eup %1627 }
 0x858   : > { %v896_v44 = vsel %vm895_vm9, %v894_v38, %v1628_v37  ;;  %v807_v45 = vrot.slane %v1628_v37, 6 }
 0x85a   : > { %1384 = vmatmul.mubr.f32.vlgmr.msra.gmra.mrb[6].mxu1 %v807_v45 }
 0x92d   : > { %v875_v47 = vpop.f32.mrb[6].mxu1 }
 0x92e   : > { %v880_v48 = vrot.slane %v875_v47, 1  ;;  %v1385_v49 = vpop.f32.mrb[7].mxu1 }
 0x930   : > { %v882_v50 = vadd.f32 %v880_v48, %v1990_v46 }
 0x932   : > { %1629 = vtanh.f32 %v882_v50 }
 0x939   :  { %170 = sbr.rel (!%p1890_p11) target bundleno = 281 (0x119), region = 67 }
 0x93c   : > { %v1630_v51 = vpop.eup %1629 }
 0x93d   : > { %v898_v52 = vsel %vm897_vm10, %v896_v44, %v1630_v51  ;;  %v902_v53 = vrot.slane %v1630_v51, 7  }
 0x93e   : > { %900 = vst [vmem:[%s899_s15] sm:$0xff] %v898_v52 }
 0x93f   : > { %v2118_v21 = vmov %v902_v53  ;;  %904 = vst [vmem:[#allocation2] sm:$0x1] (%p1890_p11), %v902_v53 }
 0x940   :  { %1708 = shalt.err (!%p1705_p2)
}
 0x941   :  { %s1709_s22 = scalar_lea.hbm %s2116_s4, 256 }
 0x942   :  { %p1710_p3 = scmp.ne.s32.totalorder %s2116_s4, %s1709_s22  ;;  %p1713_p4 = scmp.lt.u32.totalorder %s1709_s22, %s2116_s4 }
 0x944   :  { %p1715_p5 = pnand %p1713_p4, %p1710_p3 }
 0x946   :  { %1718 = shalt.err (!%p1715_p5)
}
 0x947   :  { %916 = dma.vmem_to_hbm [thread:$0]  %s911_s17, 256, %s2116_s4, [#allocation6], %s1743_s27, %s1743_s27, %s1744_s28  }
 0x948   :  { %1731 = dma.done.wait [#allocation6], 256  }
 0x949   :  { %1732 = vsyncadd [#allocation6], 4294967040 }
 0x94a   :  { %920 = vsyncpa [#allocation5], 1 }
 0x94b   :  { %921 = vsyncpa [#allocation8], 1 }
 0x94c   :  { %922 = vsyncpa [#allocation6], 1 }

</bundles_post_ra>
